<compile_context>
chip_gen: v7x
topology: tpu7x:2x2x1
jax: 0.10.0
libtpu: 0.0.40
codegen_flags: <defaults>
</compile_context>

<pallas_src>
import jax
import jax.numpy as jnp
from jax.experimental import pallas as pl
from jax.experimental.pallas import tpu as pltpu

C_IN = 3      # RGB input channels
DI = 32       # PSP output channels (di)
H1 = 64       # instance_color hidden
H2 = 256      # instance_color output
TM = 256      # rows (gathered pixels) per grid step


def _feature2d_kernel(x_ref, w0_ref, b0_ref, w1_ref, b1_ref, w2_ref, b2_ref,
                      o_ref):
    """One tile of TM gathered pixels per grid step.

    x_ref:  (TM, C_IN) f32   -- gathered pixel rows
    w0/b0:  (C_IN, DI), (1, DI)   -- PSP stub 1x1 conv
    w1/b1:  (DI, H1), (1, H1)     -- Conv1d(32, 64, 1)
    w2/b2:  (H1, H2), (1, H2)     -- Conv1d(64, 256, 1)
    o_ref:  (TM, H2) f32          -- lane-dense output tile
    """
    x = x_ref[...]                                              # (TM, C_IN)

    # PSP stub: per-pixel 1x1 conv + ReLU.
    feat = jnp.dot(x, w0_ref[...], preferred_element_type=jnp.float32)
    feat = jnp.maximum(feat + b0_ref[...], 0.0)                 # (TM, DI)

    # instance_color: Conv1d(32,64,1)+ReLU ; Conv1d(64,256,1)+ReLU.
    h = jnp.dot(feat, w1_ref[...], preferred_element_type=jnp.float32)
    h = jnp.maximum(h + b1_ref[...], 0.0)                       # (TM, H1)
    out = jnp.dot(h, w2_ref[...], preferred_element_type=jnp.float32)
    o_ref[...] = jnp.maximum(out + b2_ref[...], 0.0)            # (TM, H2)


def feature2d_net(img, choose, params):
    """img: (bs, 3, H, W) f32 (NCHW, like PyTorch); choose: (bs, n_pts) int32.

    Returns (bs, 256, n_pts) f32, matching the PyTorch module output.
    """
    bs, c, h, w = img.shape
    assert c == C_IN
    hw = h * w
    n_pts = choose.shape[1]

    # --- Gather FIRST (valid because the PSP stub is a per-pixel 1x1 conv).
    # NCHW -> (bs, hw, C), then pick the chosen pixel rows (XLA gather in HBM).
    x_pix = jnp.transpose(img.reshape(bs, c, hw), (0, 2, 1)).astype(jnp.float32)
    idx = choose.astype(jnp.int32)[:, :, None]                  # (bs, n_pts, 1)
    gathered = jnp.take_along_axis(
        x_pix, jnp.broadcast_to(idx, (bs, n_pts, c)), axis=1)   # (bs, n_pts, C)

    # --- Flatten to rows and pad to a multiple of TM for full tiles.
    rows = bs * n_pts
    rows_padded = pl.cdiv(rows, TM) * TM
    x_rows = gathered.reshape(rows, c)
    if rows_padded != rows:
        x_rows = jnp.pad(x_rows, ((0, rows_padded - rows), (0, 0)))

    w0, b0, w1, b1, w2, b2 = params
    b0 = b0.reshape(1, DI)
    b1 = b1.reshape(1, H1)
    b2 = b2.reshape(1, H2)

    const_spec = lambda shape: pl.BlockSpec(shape, lambda i: (0, 0))

    out_rows = pl.pallas_call(
        _feature2d_kernel,
        out_shape=jax.ShapeDtypeStruct((rows_padded, H2), jnp.float32),
        grid_spec=pltpu.PrefetchScalarGridSpec(
            num_scalar_prefetch=0,
            grid=(rows_padded // TM,),
            in_specs=[
                pl.BlockSpec((TM, C_IN), lambda i: (i, 0)),     # gathered pixels
                const_spec((C_IN, DI)),                         # w0
                const_spec((1, DI)),                            # b0
                const_spec((DI, H1)),                           # w1
                const_spec((1, H1)),                            # b1
                const_spec((H1, H2)),                           # w2
                const_spec((1, H2)),                            # b2
            ],
            out_specs=pl.BlockSpec((TM, H2), lambda i: (i, 0)),
        ),
        compiler_params=pltpu.CompilerParams(
            dimension_semantics=("parallel",),
            vmem_limit_bytes=16 << 20),
    )(x_rows, w0, b0, w1, b1, w2, b2)

    # Drop padding rows, back to PyTorch convention (bs, 256, n_pts).
    out = out_rows[:rows].reshape(bs, n_pts, H2)
    return jnp.transpose(out, (0, 2, 1))


def init_params(key):
    ks = jax.random.split(key, 6)
    w0 = 0.2 * jax.random.normal(ks[0], (C_IN, DI), jnp.float32)
    b0 = 0.1 * jax.random.normal(ks[1], (DI,), jnp.float32)
    w1 = 0.1 * jax.random.normal(ks[2], (DI, H1), jnp.float32)
    b1 = 0.1 * jax.random.normal(ks[3], (H1,), jnp.float32)
    w2 = 0.1 * jax.random.normal(ks[4], (H1, H2), jnp.float32)
    b2 = 0.1 * jax.random.normal(ks[5], (H2,), jnp.float32)
    return (w0, b0, w1, b1, w2, b2)


def _reference(img, choose, params):
    """Pure-JAX reference mirroring the PyTorch forward (with the PSP stub)."""
    w0, b0, w1, b1, w2, b2 = params
    bs, c, h, w = img.shape
    hw = h * w
    feat = jnp.einsum('bchw,cd->bdhw', img, w0) + b0[None, :, None, None]
    feat = jnp.maximum(feat, 0.0)                         # (bs, DI, H, W)
    emb = feat.reshape(bs, DI, hw)
    idx = jnp.broadcast_to(choose[:, None, :], (bs, DI, choose.shape[1]))
    emb = jnp.take_along_axis(emb, idx, axis=2)           # (bs, DI, n_pts)
    hmid = jnp.maximum(jnp.einsum('bcn,cd->bdn', emb, w1) + b1[None, :, None], 0.0)
    out = jnp.maximum(jnp.einsum('bcn,cd->bdn', hmid, w2) + b2[None, :, None], 0.0)
    return out                                            # (bs, 256, n_pts)


if __name__ == "__main__":
    key = jax.random.PRNGKey(0)
    k_img, k_choose, k_params = jax.random.split(key, 3)

    bs, h, w, n_pts = 2, 16, 16, 8
    img = jax.random.normal(k_img, (bs, C_IN, h, w), jnp.float32)
    choose = jax.random.randint(k_choose, (bs, n_pts), 0, h * w, jnp.int32)
    params = init_params(k_params)

    out = feature2d_net(img, choose, params)
    out = jax.block_until_ready(out)

    ref = _reference(img, choose, params)
    assert out.shape == (bs, H2, n_pts), out.shape
    assert jnp.allclose(out, ref, atol=1e-4, rtol=1e-4), "mismatch vs reference"
    print("KERNEL_OK")
</pallas_src>

<mosaic_0001>
module attributes {stable_mosaic.version = 11 : i64} {
  func.func @_feature2d_kernel(%arg0: i32, %arg1: memref<256x3xf32, #tpu.memory_space<vmem>>, %arg2: memref<3x32xf32, #tpu.memory_space<vmem>>, %arg3: memref<1x32xf32, #tpu.memory_space<vmem>>, %arg4: memref<32x64xf32, #tpu.memory_space<vmem>>, %arg5: memref<1x64xf32, #tpu.memory_space<vmem>>, %arg6: memref<64x256xf32, #tpu.memory_space<vmem>>, %arg7: memref<1x256xf32, #tpu.memory_space<vmem>>, %arg8: memref<256x256xf32, #tpu.memory_space<vmem>>) attributes {dimension_semantics = [#tpu.dimension_semantics<parallel>], iteration_bounds = array<i64: 1>, scalar_prefetch = 0 : i64, scratch_operands = 0 : i64, tpu.core_type = #tpu.core_type<tc>, window_params = [{transform_indices = @transform_0, window_bounds = array<i64: 256, 3>}, {pipeline_mode = #tpu.pipeline_mode<synchronous>, transform_indices = @transform_1, window_bounds = array<i64: 3, 32>}, {pipeline_mode = #tpu.pipeline_mode<synchronous>, transform_indices = @transform_2, window_bounds = array<i64: 1, 32>}, {pipeline_mode = #tpu.pipeline_mode<synchronous>, transform_indices = @transform_3, window_bounds = array<i64: 32, 64>}, {pipeline_mode = #tpu.pipeline_mode<synchronous>, transform_indices = @transform_4, window_bounds = array<i64: 1, 64>}, {pipeline_mode = #tpu.pipeline_mode<synchronous>, transform_indices = @transform_5, window_bounds = array<i64: 64, 256>}, {pipeline_mode = #tpu.pipeline_mode<synchronous>, transform_indices = @transform_6, window_bounds = array<i64: 1, 256>}, {transform_indices = @transform_7, window_bounds = array<i64: 256, 256>}]} {
    %c0 = arith.constant 0 : index
    %c0_0 = arith.constant 0 : index
    %0 = vector.load %arg1[%c0, %c0_0] : memref<256x3xf32, #tpu.memory_space<vmem>>, vector<256x3xf32>
    %c0_1 = arith.constant 0 : index
    %c0_2 = arith.constant 0 : index
    %1 = vector.load %arg2[%c0_1, %c0_2] : memref<3x32xf32, #tpu.memory_space<vmem>>, vector<3x32xf32>
    %cst = arith.constant dense<0.000000e+00> : vector<256x32xf32>
    %2 = tpu.matmul %0, %1, %cst {dimension_numbers = #tpu.dot_dimension_numbers<[1], [0], [0], [1], [0, 0, 1, 1], [], []>} : vector<256x3xf32>, vector<3x32xf32>, vector<256x32xf32> -> vector<256x32xf32>
    %c0_3 = arith.constant 0 : index
    %c0_4 = arith.constant 0 : index
    %3 = vector.load %arg3[%c0_3, %c0_4] : memref<1x32xf32, #tpu.memory_space<vmem>>, vector<1x32xf32>
    %4 = vector.broadcast %3 : vector<1x32xf32> to vector<256x32xf32>
    %5 = arith.addf %2, %4 : vector<256x32xf32>
    %cst_5 = arith.constant 0.000000e+00 : f32
    %6 = vector.broadcast %cst_5 : f32 to vector<256x32xf32>
    %7 = arith.maximumf %5, %6 : vector<256x32xf32>
    %c0_6 = arith.constant 0 : index
    %c0_7 = arith.constant 0 : index
    %8 = vector.load %arg4[%c0_6, %c0_7] : memref<32x64xf32, #tpu.memory_space<vmem>>, vector<32x64xf32>
    %cst_8 = arith.constant dense<0.000000e+00> : vector<256x64xf32>
    %9 = tpu.matmul %7, %8, %cst_8 {dimension_numbers = #tpu.dot_dimension_numbers<[1], [0], [0], [1], [0, 0, 1, 1], [], []>} : vector<256x32xf32>, vector<32x64xf32>, vector<256x64xf32> -> vector<256x64xf32>
    %c0_9 = arith.constant 0 : index
    %c0_10 = arith.constant 0 : index
    %10 = vector.load %arg5[%c0_9, %c0_10] : memref<1x64xf32, #tpu.memory_space<vmem>>, vector<1x64xf32>
    %11 = vector.broadcast %10 : vector<1x64xf32> to vector<256x64xf32>
    %12 = arith.addf %9, %11 : vector<256x64xf32>
    %cst_11 = arith.constant 0.000000e+00 : f32
    %13 = vector.broadcast %cst_11 : f32 to vector<256x64xf32>
    %14 = arith.maximumf %12, %13 : vector<256x64xf32>
    %c0_12 = arith.constant 0 : index
    %c0_13 = arith.constant 0 : index
    %15 = vector.load %arg6[%c0_12, %c0_13] : memref<64x256xf32, #tpu.memory_space<vmem>>, vector<64x256xf32>
    %cst_14 = arith.constant dense<0.000000e+00> : vector<256x256xf32>
    %16 = tpu.matmul %14, %15, %cst_14 {dimension_numbers = #tpu.dot_dimension_numbers<[1], [0], [0], [1], [0, 0, 1, 1], [], []>} : vector<256x64xf32>, vector<64x256xf32>, vector<256x256xf32> -> vector<256x256xf32>
    %c0_15 = arith.constant 0 : index
    %c0_16 = arith.constant 0 : index
    %17 = vector.load %arg7[%c0_15, %c0_16] : memref<1x256xf32, #tpu.memory_space<vmem>>, vector<1x256xf32>
    %18 = vector.broadcast %17 : vector<1x256xf32> to vector<256x256xf32>
    %19 = arith.addf %16, %18 : vector<256x256xf32>
    %cst_17 = arith.constant 0.000000e+00 : f32
    %20 = vector.broadcast %cst_17 : f32 to vector<256x256xf32>
    %21 = arith.maximumf %19, %20 : vector<256x256xf32>
    %c0_18 = arith.constant 0 : index
    %c0_19 = arith.constant 0 : index
    %22 = vector.load %arg8[%c0_18, %c0_19] : memref<256x256xf32, #tpu.memory_space<vmem>>, vector<256x256xf32>
    tpu.vector_store %arg8[%c0_18, %c0_19], %21 {strides = array<i32>} : memref<256x256xf32, #tpu.memory_space<vmem>>, vector<256x256xf32>,
    return
  }
  func.func @transform_0(%arg0: i32) -> (i32, i32) {
    %c0_i32 = arith.constant 0 : i32
    %c0_i32_0 = arith.constant 0 : i32
    return %arg0, %c0_i32 : i32, i32
  }
  func.func @transform_1(%arg0: i32) -> (i32, i32) {
    %c0_i32 = arith.constant 0 : i32
    %c0_i32_0 = arith.constant 0 : i32
    %c0_i32_1 = arith.constant 0 : i32
    return %c0_i32, %c0_i32_0 : i32, i32
  }
  func.func @transform_2(%arg0: i32) -> (i32, i32) {
    %c0_i32 = arith.constant 0 : i32
    %c0_i32_0 = arith.constant 0 : i32
    %c0_i32_1 = arith.constant 0 : i32
    return %c0_i32, %c0_i32_0 : i32, i32
  }
  func.func @transform_3(%arg0: i32) -> (i32, i32) {
    %c0_i32 = arith.constant 0 : i32
    %c0_i32_0 = arith.constant 0 : i32
    %c0_i32_1 = arith.constant 0 : i32
    return %c0_i32, %c0_i32_0 : i32, i32
  }
  func.func @transform_4(%arg0: i32) -> (i32, i32) {
    %c0_i32 = arith.constant 0 : i32
    %c0_i32_0 = arith.constant 0 : i32
    %c0_i32_1 = arith.constant 0 : i32
    return %c0_i32, %c0_i32_0 : i32, i32
  }
  func.func @transform_5(%arg0: i32) -> (i32, i32) {
    %c0_i32 = arith.constant 0 : i32
    %c0_i32_0 = arith.constant 0 : i32
    %c0_i32_1 = arith.constant 0 : i32
    return %c0_i32, %c0_i32_0 : i32, i32
  }
  func.func @transform_6(%arg0: i32) -> (i32, i32) {
    %c0_i32 = arith.constant 0 : i32
    %c0_i32_0 = arith.constant 0 : i32
    %c0_i32_1 = arith.constant 0 : i32
    return %c0_i32, %c0_i32_0 : i32, i32
  }
  func.func @transform_7(%arg0: i32) -> (i32, i32) {
    %c0_i32 = arith.constant 0 : i32
    %c0_i32_0 = arith.constant 0 : i32
    return %arg0, %c0_i32 : i32, i32
  }
}

</mosaic_0001>

<bundles_post_ra>
// kernel: tpu_custom_call.1
= control target key start
LH: loop header
LB: loop body
LE: loop exit
PB: predicated region body
PF: predicated region fallthrough
CT: control target
= control target key end

     0   :  { %vm164_vm0 = vcmask 1042432   ;;  %vm67_vm1 = vcmask 23552   ;;  %s2147_s0 = inlined_call_operand.vmem [shape: f32[256,3], index: 0, kind: input, shape index: {}]   ;;  %s2148_s1 = inlined_call_operand.vmem [shape: f32[3,32], index: 1, kind: input, shape index: {}]   ;;  %s2149_s2 = inlined_call_operand.vmem [shape: f32[1,32], index: 2, kind: input, shape index: {}]   ;;  %s2150_s3 = inlined_call_operand.vmem [shape: f32[32,64], index: 3, kind: input, shape index: {}]   ;;  %s2151_s4 = inlined_call_operand.vmem [shape: f32[1,64], index: 4, kind: input, shape index: {}]   ;;  %s2152_s5 = inlined_call_operand.vmem [shape: f32[64,256], index: 5, kind: input, shape index: {}]   ;;  %s2153_s6 = inlined_call_operand.vmem [shape: f32[1,256], index: 6, kind: input, shape index: {}]   ;;  %s2154_s7 = inlined_call_operand.hbm [shape: f32[256,256], index: 7, kind: output, shape index: {}]  }
   0x1   :  { %v59_v0 = vld [vmem:[%s2148_s1] sm:$0x7]  ;;  %v28_v2 = vld [vmem:[%s2147_s0 + $0x8] sm:$0xff]  ;;  %v29_v3 = vld [vmem:[%s2147_s0 + $0x10] sm:$0xff] }
   0x2   :  { %v27_v1 = vld [vmem:[%s2147_s0] sm:$0xff]  ;;  %1484 = vmatprep.subr.msk.mxu0 %vm164_vm0, %v59_v0  ;;  %v30_v4 = vld [vmem:[%s2147_s0 + $0x18] sm:$0xff]  ;;  %v32_v6 = vld [vmem:[%s2147_s0 + $0x28] sm:$0xff] }
   0x3   :  { %1486 = vmatprep.mubr.msk.f32.mxu0 %vm67_vm1, %v27_v1  ;;  %1485 = vmatpush3.msk.msra.mxu0 %vm164_vm0, %v59_v0  ;;  %v31_v5 = vld [vmem:[%s2147_s0 + $0x20] sm:$0xff]  ;;  %v33_v7 = vld [vmem:[%s2147_s0 + $0x30] sm:$0xff]  ;;  %v426_v9 = vld [vmem:[%s2150_s3 + $0x8] sm:$0xff] }
   0x4   :  { %1487 = vmatmul.mubr.msk.f32.vlgmr.msra.gmra.mrb[0].mxu0 %vm67_vm1, %v28_v2  ;;  %v425_v8 = vld [vmem:[%s2150_s3] sm:$0xff] }
   0x5   :  { %1489 = vmatprep.mubr.msk.f32.mxu0 %vm67_vm1, %v29_v3 }
   0x8   :  { %1490 = vmatmul.mubr.msk.f32.gmra.mrb[2].mxu0 %vm67_vm1, %v30_v4 }
   0x9   :  { %1492 = vmatprep.mubr.msk.f32.mxu0 %vm67_vm1, %v31_v5 }
   0xc   :  { %1493 = vmatmul.mubr.msk.f32.gmra.mrb[4].mxu0 %vm67_vm1, %v32_v6 }
   0xd   :  { %12 = vsyncpa [#allocation3], 0  ;;  %1495 = vmatprep.mubr.msk.f32.mxu0 %vm67_vm1, %v33_v7  ;;  %v34_v10 = vld [vmem:[%s2147_s0 + $0x38] sm:$0xff]  ;;  %v1590_v11 = vpack.c.bf16 %v426_v9, %v425_v8  ;;  %v35_v12 = vld [vmem:[%s2147_s0 + $0x40] sm:$0xff]  ;;  %vm436_vm2 = vcmask 261120   ;;  %vm818_vm3 = vcmask 523264  }
   0xe   :  { %v36_v13 = vld [vmem:[%s2147_s0 + $0x48] sm:$0xff]  ;;  %v37_v14 = vld [vmem:[%s2147_s0 + $0x50] sm:$0xff]  ;;  %v38_v15 = vld [vmem:[%s2147_s0 + $0x58] sm:$0xff] }
   0xf   :  { %1591 = vmatprep.subr.bf16.mxu1 %v1590_v11  ;;  %v39_v16 = vld [vmem:[%s2147_s0 + $0x60] sm:$0xff]  ;;  %v40_v17 = vld [vmem:[%s2147_s0 + $0x68] sm:$0xff]  ;;  %v41_v18 = vld [vmem:[%s2147_s0 + $0x70] sm:$0xff] }
  0x10   :  { %1496 = vmatmul.mubr.msk.f32.gmra.mrb[6].mxu0 %vm67_vm1, %v34_v10  ;;  %1593 = vmatpush3.bf16.msra.mxu1 %v1590_v11  ;;  %v42_v19 = vld [vmem:[%s2147_s0 + $0x78] sm:$0xff]  ;;  %v43_v20 = vld [vmem:[%s2147_s0 + $0x80] sm:$0xff]  ;;  %v44_v21 = vld [vmem:[%s2147_s0 + $0x88] sm:$0xff] }
  0x11   :  { %1498 = vmatprep.mubr.msk.f32.mxu0 %vm67_vm1, %v35_v12  ;;  %v45_v22 = vld [vmem:[%s2147_s0 + $0x90] sm:$0xff]  ;;  %v46_v23 = vld [vmem:[%s2147_s0 + $0x98] sm:$0xff]  ;;  %v47_v24 = vld [vmem:[%s2147_s0 + $0xa0] sm:$0xff] }
  0x12   :  { %v48_v25 = vld [vmem:[%s2147_s0 + $0xa8] sm:$0xff]  ;;  %v49_v26 = vld [vmem:[%s2147_s0 + $0xb0] sm:$0xff]  ;;  %v50_v27 = vld [vmem:[%s2147_s0 + $0xb8] sm:$0xff] }
  0x13   :  { %v51_v28 = vld [vmem:[%s2147_s0 + $0xc0] sm:$0xff]  ;;  %v52_v29 = vld [vmem:[%s2147_s0 + $0xc8] sm:$0xff]  ;;  %v53_v30 = vld [vmem:[%s2147_s0 + $0xd0] sm:$0xff] }
  0x14   :  { %1499 = vmatmul.mubr.msk.f32.gmra.mrb[8].mxu0 %vm67_vm1, %v36_v13  ;;  %v54_v31 = vld [vmem:[%s2147_s0 + $0xd8] sm:$0xff]  ;;  %v55_v32 = vld [vmem:[%s2147_s0 + $0xe0] sm:$0xff]  ;;  %v56_v33 = vld [vmem:[%s2147_s0 + $0xe8] sm:$0xff] }
  0x15   :  { %1501 = vmatprep.mubr.msk.f32.mxu0 %vm67_vm1, %v37_v14  ;;  %v57_v34 = vld [vmem:[%s2147_s0 + $0xf0] sm:$0xff]  ;;  %v58_v35 = vld [vmem:[%s2147_s0 + $0xf8] sm:$0xff]  ;;  %v791_v39 = vld [vmem:[%s2152_s5 + $0x8] sm:$0xff] }
  0x16   :  { %v427_v36 = vld [vmem:[%s2150_s3 + $0x10] sm:$0xff]  ;;  %v428_v37 = vld [vmem:[%s2150_s3 + $0x18] sm:$0xff]  ;;  %v790_v41 = vld [vmem:[%s2152_s5] sm:$0xff] }
  0x17   :  { %v1594_v38 = vpack.c.bf16 %v428_v37, %v427_v36  ;;  %v793_v40 = vld [vmem:[%s2152_s5 + $0x18] sm:$0xff]  ;;  %v792_v43 = vld [vmem:[%s2152_s5 + $0x10] sm:$0xff]  ;;  %v795_v44 = vld [vmem:[%s2152_s5 + $0x28] sm:$0xff] }
  0x18   :  { %1502 = vmatmul.mubr.msk.f32.gmra.mrb[10].mxu0 %vm67_vm1, %v38_v15  ;;  %v1598_v42 = vpack.c.bf16 %v793_v40, %v791_v39  ;;  %v797_v45 = vld [vmem:[%s2152_s5 + $0x38] sm:$0xff]  ;;  %v1600_v46 = vpack.c.bf16 %v792_v43, %v790_v41  ;;  %v794_v48 = vld [vmem:[%s2152_s5 + $0x20] sm:$0xff]  ;;  %v796_v49 = vld [vmem:[%s2152_s5 + $0x30] sm:$0xff] }
  0x19   :  { %1504 = vmatprep.mubr.msk.f32.mxu0 %vm67_vm1, %v39_v16  ;;  %1595 = vmatprep.subr.bf16.mxu1 %v1594_v38  ;;  %v1602_v47 = vpack.c.bf16 %v797_v45, %v795_v44  ;;  %v799_v50 = vld [vmem:[%s2152_s5 + $0x48] sm:$0xff]  ;;  %v801_v51 = vld [vmem:[%s2152_s5 + $0x58] sm:$0xff]  ;;  %v1604_v52 = vpack.c.bf16 %v796_v49, %v794_v48  ;;  %v798_v54 = vld [vmem:[%s2152_s5 + $0x40] sm:$0xff] }
  0x1a   :  { %1597 = vmatpush3.bf16.msra.mxu1 %v1594_v38  ;;  %1599 = vmatprep.subr.bf16.mxu0 %v1598_v42  ;;  %v1606_v53 = vpack.c.bf16 %v801_v51, %v799_v50  ;;  %v800_v55 = vld [vmem:[%s2152_s5 + $0x50] sm:$0xff]  ;;  %v1876_v57 = vld [vmem:[%s2149_s2] ss:$0 sm:$0xff] }
  0x1b   :  { %1614 = vmatprep.subr.bf16.mxu1 %v1598_v42  ;;  %1601 = vmatpush1.bf16.msra.mxu0 %v1600_v46  ;;  %v1608_v56 = vpack.c.bf16 %v800_v55, %v798_v54 }
  0x1c   :  { %1505 = vmatmul.mubr.msk.f32.gmra.mrb[12].mxu0 %vm67_vm1, %v40_v17  ;;  %1603 = vmatprep.subr.bf16.mxu0 %v1602_v47 }
  0x1d   :  { %1507 = vmatprep.mubr.msk.f32.mxu0 %vm67_vm1, %v41_v18 }
  0x1f   :  { %1605 = vmatpush1.bf16.msra.mxu0 %v1604_v52 }
  0x20   :  { %1508 = vmatmul.mubr.msk.f32.gmra.mrb[14].mxu0 %vm67_vm1, %v42_v19  ;;  %1607 = vmatprep.subr.bf16.mxu0 %v1606_v53 }
  0x21   :  { %1510 = vmatprep.mubr.msk.f32.mxu0 %vm67_vm1, %v43_v20 }
  0x23   :  { %1609 = vmatpush1.bf16.msra.mxu0 %v1608_v56 }
  0x24   :  { %1511 = vmatmul.mubr.msk.f32.gmra.mrb[16].mxu0 %vm67_vm1, %v44_v21 }
  0x25   :  { %1513 = vmatprep.mubr.msk.f32.mxu0 %vm67_vm1, %v45_v22 }
  0x28   :  { %1514 = vmatmul.mubr.msk.f32.gmra.mrb[18].mxu0 %vm67_vm1, %v46_v23 }
  0x29   :  { %1516 = vmatprep.mubr.msk.f32.mxu0 %vm67_vm1, %v47_v24 }
  0x2c   :  { %1517 = vmatmul.mubr.msk.f32.gmra.mrb[20].mxu0 %vm67_vm1, %v48_v25 }
  0x2d   :  { %1519 = vmatprep.mubr.msk.f32.mxu0 %vm67_vm1, %v49_v26 }
  0x30   :  { %1520 = vmatmul.mubr.msk.f32.gmra.mrb[22].mxu0 %vm67_vm1, %v50_v27 }
  0x31   :  { %1522 = vmatprep.mubr.msk.f32.mxu0 %vm67_vm1, %v51_v28 }
  0x34   :  { %1523 = vmatmul.mubr.msk.f32.gmra.mrb[24].mxu0 %vm67_vm1, %v52_v29 }
  0x35   :  { %1525 = vmatprep.mubr.msk.f32.mxu0 %vm67_vm1, %v53_v30 }
  0x38   :  { %1526 = vmatmul.mubr.msk.f32.gmra.mrb[26].mxu0 %vm67_vm1, %v54_v31 }
  0x39   :  { %1528 = vmatprep.mubr.msk.f32.mxu0 %vm67_vm1, %v55_v32 }
  0x3c   :  { %1529 = vmatmul.mubr.msk.f32.gmra.mrb[28].mxu0 %vm67_vm1, %v56_v33 }
  0x3d   :  { %1531 = vmatprep.mubr.msk.f32.mxu0 %vm67_vm1, %v57_v34 }
  0x40   :  { %1532 = vmatmul.mubr.msk.f32.gmra.mrb[30].mxu0 %vm67_vm1, %v58_v35 }
  0xd7   :  { %v1488_v58 = vpop.f32.mrb[0].mxu0 }
  0xd8   :  { %v240_v59 = vadd.f32 %v1488_v58, %v1876_v57  ;;  %v234_v60 = vpop.f32.mrb[1].mxu0 }
  0xd9   :  { %v235_v61 = vadd.f32 %v1876_v57, %v234_v60 }
  0xda   :  { %v394_v0 = vmax.f32 %v240_v59, 0.0 }
  0xdb   :  { %v393_v62 = vmax.f32 %v235_v61, 0.0  ;;  %v1491_v63 = vpop.f32.mrb[2].mxu0 }
  0xdc   :  { %v250_v1 = vadd.f32 %v1491_v63, %v1876_v57  ;;  %v244_v2 = vpop.f32.mrb[3].mxu0 }
  0xdd   :  { %v245_v3 = vadd.f32 %v1876_v57, %v244_v2  ;;  %1542 = vmatprep.mubr.msk.f32.mxu1 %vm436_vm2, %v393_v62 }
  0xde   :  { %1543 = vmatmul.mubr.msk.f32.vlgmr.msra.gmra.mrb[0].mxu1 %vm436_vm2, %v394_v0  ;;  %v396_v6 = vmax.f32 %v250_v1, 0.0 }
  0xdf   :  { %v395_v4 = vmax.f32 %v245_v3, 0.0  ;;  %v1494_v5 = vpop.f32.mrb[4].mxu0  ;;  %1618 = vmatpush1.bf16.msra.mxu1 %v1600_v46 }
  0xe0   :  { %v260_v7 = vadd.f32 %v1494_v5, %v1876_v57  ;;  %v254_v8 = vpop.f32.mrb[5].mxu0  ;;  %1615 = vmatprep.subr.bf16.mxu1 %v1602_v47 }
  0xe1   :  { %v255_v9 = vadd.f32 %v1876_v57, %v254_v8  ;;  %1545 = vmatprep.mubr.msk.f32.mxu1 %vm436_vm2, %v395_v4 }
  0xe2   :  { %1546 = vmatmul.mubr.msk.f32.gmra.mrb[2].mxu1 %vm436_vm2, %v396_v6  ;;  %v398_v12 = vmax.f32 %v260_v7, 0.0 }
  0xe3   :  { %v397_v10 = vmax.f32 %v255_v9, 0.0  ;;  %v1497_v11 = vpop.f32.mrb[6].mxu0  ;;  %1619 = vmatpush1.bf16.msra.mxu1 %v1604_v52 }
  0xe4   :  { %v270_v13 = vadd.f32 %v1497_v11, %v1876_v57  ;;  %v264_v14 = vpop.f32.mrb[7].mxu0  ;;  %1616 = vmatprep.subr.bf16.mxu1 %v1606_v53 }
  0xe5   :  { %v265_v15 = vadd.f32 %v1876_v57, %v264_v14  ;;  %1548 = vmatprep.mubr.msk.f32.mxu1 %vm436_vm2, %v397_v10 }
  0xe6   :  { %1549 = vmatmul.mubr.msk.f32.gmra.mrb[4].mxu1 %vm436_vm2, %v398_v12  ;;  %v400_v18 = vmax.f32 %v270_v13, 0.0 }
  0xe7   :  { %v399_v16 = vmax.f32 %v265_v15, 0.0  ;;  %v1500_v17 = vpop.f32.mrb[8].mxu0  ;;  %1620 = vmatpush1.bf16.msra.mxu1 %v1608_v56 }
  0xe8   :  { %v280_v19 = vadd.f32 %v1500_v17, %v1876_v57  ;;  %v274_v20 = vpop.f32.mrb[9].mxu0 }
  0xe9   :  { %v275_v21 = vadd.f32 %v1876_v57, %v274_v20  ;;  %1551 = vmatprep.mubr.msk.f32.mxu1 %vm436_vm2, %v399_v16 }
  0xea   :  { %1552 = vmatmul.mubr.msk.f32.gmra.mrb[6].mxu1 %vm436_vm2, %v400_v18  ;;  %v402_v24 = vmax.f32 %v280_v19, 0.0 }
  0xeb   :  { %v401_v22 = vmax.f32 %v275_v21, 0.0  ;;  %v1503_v23 = vpop.f32.mrb[10].mxu0 }
  0xec   :  { %v290_v25 = vadd.f32 %v1503_v23, %v1876_v57  ;;  %v284_v26 = vpop.f32.mrb[11].mxu0 }
  0xed   :  { %v285_v27 = vadd.f32 %v1876_v57, %v284_v26  ;;  %1554 = vmatprep.mubr.msk.f32.mxu1 %vm436_vm2, %v401_v22 }
  0xee   :  { %1555 = vmatmul.mubr.msk.f32.gmra.mrb[8].mxu1 %vm436_vm2, %v402_v24  ;;  %v404_v30 = vmax.f32 %v290_v25, 0.0 }
  0xef   :  { %v403_v28 = vmax.f32 %v285_v27, 0.0  ;;  %v1506_v29 = vpop.f32.mrb[12].mxu0  ;;  %v803_v27 = vld [vmem:[%s2152_s5 + $0x68] sm:$0xff] }
  0xf0   :  { %v300_v31 = vadd.f32 %v1506_v29, %v1876_v57  ;;  %v294_v32 = vpop.f32.mrb[13].mxu0 }
  0xf1   :  { %v295_v33 = vadd.f32 %v1876_v57, %v294_v32  ;;  %1557 = vmatprep.mubr.msk.f32.mxu1 %vm436_vm2, %v403_v28  ;;  %v805_v28 = vld [vmem:[%s2152_s5 + $0x78] sm:$0xff]  ;;  %v1650_v32 = vmov 0.0  }
  0xf2   :  { %1558 = vmatmul.mubr.msk.f32.gmra.mrb[10].mxu1 %vm436_vm2, %v404_v30  ;;  %v406_v36 = vmax.f32 %v300_v31, 0.0  ;;  %v1610_v29 = vpack.c.bf16 %v805_v28, %v803_v27  ;;  %v804_v30 = vld [vmem:[%s2152_s5 + $0x70] sm:$0xff]  ;;  %979 = vmatprep.mubr.f32.mxu0 %v1650_v32 }
  0xf3   :  { %v405_v34 = vmax.f32 %v295_v33, 0.0  ;;  %v1509_v35 = vpop.f32.mrb[14].mxu0  ;;  %v1959_v33 = vld [vmem:[%s2151_s4] ss:$0 sm:$0xff] }
  0xf4   :  { %v310_v37 = vadd.f32 %v1509_v35, %v1876_v57  ;;  %v304_v38 = vpop.f32.mrb[15].mxu0  ;;  %1611 = vmatprep.subr.bf16.mxu0 %v1610_v29  ;;  %1617 = vmatprep.subr.bf16.mxu1 %v1610_v29 }
  0xf5   :  { %v305_v39 = vadd.f32 %v1876_v57, %v304_v38  ;;  %1560 = vmatprep.mubr.msk.f32.mxu1 %vm436_vm2, %v405_v34 }
  0xf6   :  { %1561 = vmatmul.mubr.msk.f32.gmra.mrb[12].mxu1 %vm436_vm2, %v406_v36  ;;  %v408_v42 = vmax.f32 %v310_v37, 0.0 }
  0xf7   :  { %v407_v40 = vmax.f32 %v305_v39, 0.0  ;;  %v1512_v41 = vpop.f32.mrb[16].mxu0 }
  0xf8   :  { %v320_v43 = vadd.f32 %v1512_v41, %v1876_v57  ;;  %v314_v44 = vpop.f32.mrb[17].mxu0 }
  0xf9   :  { %v315_v45 = vadd.f32 %v1876_v57, %v314_v44  ;;  %1563 = vmatprep.mubr.msk.f32.mxu1 %vm436_vm2, %v407_v40 }
  0xfa   :  { %1564 = vmatmul.mubr.msk.f32.gmra.mrb[14].mxu1 %vm436_vm2, %v408_v42  ;;  %v410_v48 = vmax.f32 %v320_v43, 0.0 }
  0xfb   :  { %v409_v46 = vmax.f32 %v315_v45, 0.0  ;;  %v1515_v47 = vpop.f32.mrb[18].mxu0 }
  0xfc   :  { %v330_v49 = vadd.f32 %v1515_v47, %v1876_v57  ;;  %v324_v50 = vpop.f32.mrb[19].mxu0 }
  0xfd   :  { %v325_v51 = vadd.f32 %v1876_v57, %v324_v50  ;;  %1566 = vmatprep.mubr.msk.f32.mxu1 %vm436_vm2, %v409_v46 }
  0xfe   :  { %1567 = vmatmul.mubr.msk.f32.gmra.mrb[16].mxu1 %vm436_vm2, %v410_v48  ;;  %v412_v54 = vmax.f32 %v330_v49, 0.0 }
  0xff   :  { %v411_v52 = vmax.f32 %v325_v51, 0.0  ;;  %v1518_v53 = vpop.f32.mrb[20].mxu0 }
 0x100   :  { %v340_v55 = vadd.f32 %v1518_v53, %v1876_v57  ;;  %v334_v56 = vpop.f32.mrb[21].mxu0 }
 0x101   :  { %v335_v58 = vadd.f32 %v1876_v57, %v334_v56  ;;  %1569 = vmatprep.mubr.msk.f32.mxu1 %vm436_vm2, %v411_v52 }
 0x102   :  { %v414_v59 = vmax.f32 %v340_v55, 0.0  ;;  %1570 = vmatmul.mubr.msk.f32.gmra.mrb[18].mxu1 %vm436_vm2, %v412_v54 }
 0x103   :  { %v413_v60 = vmax.f32 %v335_v58, 0.0  ;;  %v1521_v61 = vpop.f32.mrb[22].mxu0 }
 0x104   :  { %v350_v62 = vadd.f32 %v1521_v61, %v1876_v57  ;;  %v344_v63 = vpop.f32.mrb[23].mxu0 }
 0x105   :  { %1572 = vmatprep.mubr.msk.f32.mxu1 %vm436_vm2, %v413_v60  ;;  %v345_v0 = vadd.f32 %v1876_v57, %v344_v63 }
 0x106   :  { %1573 = vmatmul.mubr.msk.f32.gmra.mrb[20].mxu1 %vm436_vm2, %v414_v59  ;;  %v416_v1 = vmax.f32 %v350_v62, 0.0 }
 0x107   :  { %v415_v2 = vmax.f32 %v345_v0, 0.0  ;;  %v1524_v3 = vpop.f32.mrb[24].mxu0 }
 0x108   :  { %v360_v4 = vadd.f32 %v1524_v3, %v1876_v57  ;;  %v354_v5 = vpop.f32.mrb[25].mxu0 }
 0x109   :  { %1575 = vmatprep.mubr.msk.f32.mxu1 %vm436_vm2, %v415_v2  ;;  %v355_v6 = vadd.f32 %v1876_v57, %v354_v5 }
 0x10a   :  { %1576 = vmatmul.mubr.msk.f32.gmra.mrb[22].mxu1 %vm436_vm2, %v416_v1  ;;  %v418_v7 = vmax.f32 %v360_v4, 0.0 }
 0x10b   :  { %v417_v8 = vmax.f32 %v355_v6, 0.0  ;;  %v1527_v9 = vpop.f32.mrb[26].mxu0 }
 0x10c   :  { %v370_v10 = vadd.f32 %v1527_v9, %v1876_v57  ;;  %v364_v11 = vpop.f32.mrb[27].mxu0 }
 0x10d   :  { %1578 = vmatprep.mubr.msk.f32.mxu1 %vm436_vm2, %v417_v8  ;;  %v365_v12 = vadd.f32 %v1876_v57, %v364_v11 }
 0x10e   :  { %1579 = vmatmul.mubr.msk.f32.gmra.mrb[24].mxu1 %vm436_vm2, %v418_v7  ;;  %v420_v13 = vmax.f32 %v370_v10, 0.0 }
 0x10f   :  { %v419_v14 = vmax.f32 %v365_v12, 0.0  ;;  %v1530_v15 = vpop.f32.mrb[28].mxu0 }
 0x110   :  { %v380_v16 = vadd.f32 %v1530_v15, %v1876_v57  ;;  %v374_v17 = vpop.f32.mrb[29].mxu0 }
 0x111   :  { %1581 = vmatprep.mubr.msk.f32.mxu1 %vm436_vm2, %v419_v14  ;;  %v375_v18 = vadd.f32 %v1876_v57, %v374_v17 }
 0x112   :  { %1582 = vmatmul.mubr.msk.f32.gmra.mrb[26].mxu1 %vm436_vm2, %v420_v13  ;;  %v422_v19 = vmax.f32 %v380_v16, 0.0 }
 0x113   :  { %v421_v20 = vmax.f32 %v375_v18, 0.0  ;;  %v1533_v21 = vpop.f32.mrb[30].mxu0 }
 0x114   :  { %v390_v22 = vadd.f32 %v1533_v21, %v1876_v57  ;;  %v384_v23 = vpop.f32.mrb[31].mxu0 }
 0x115   :  { %1584 = vmatprep.mubr.msk.f32.mxu1 %vm436_vm2, %v421_v20  ;;  %v385_v24 = vadd.f32 %v1876_v57, %v384_v23  ;;  %v802_v57 = vld [vmem:[%s2152_s5 + $0x60] sm:$0xff] }
 0x116   :  { %1585 = vmatmul.mubr.msk.f32.gmra.mrb[28].mxu1 %vm436_vm2, %v422_v19  ;;  %v424_v25 = vmax.f32 %v390_v22, 0.0  ;;  %v1612_v31 = vpack.c.bf16 %v804_v30, %v802_v57 }
 0x117   :  { %v423_v26 = vmax.f32 %v385_v24, 0.0 }
 0x118   :  { %1613 = vmatpush1.bf16.msra.mxu0 %v1612_v31  ;;  %1621 = vmatpush1.bf16.msra.mxu1 %v1612_v31 }
 0x119   :  { %1587 = vmatprep.mubr.msk.f32.mxu1 %vm436_vm2, %v423_v26 }
 0x11a   :  { %1588 = vmatmul.mubr.msk.f32.gmra.mrb[30].mxu1 %vm436_vm2, %v424_v25 }
 0x11b   :  { %1081 = vmatprep.mubr.f32.mxu1 %v1650_v32 }
 0x1b1   :  { %v1544_v34 = vpop.f32.mrb[0].mxu1 }
 0x1b2   :  { %v599_v35 = vpop.f32.mrb[1].mxu1  ;;  %v605_v37 = vadd.f32 %v1544_v34, %v1959_v33 }
 0x1b3   :  { %v600_v36 = vadd.f32 %v1959_v33, %v599_v35 }
 0x1b4   :  { %v759_v41 = vmax.f32 %v605_v37, 0.0 }
 0x1b5   :  { %v758_v38 = vmax.f32 %v600_v36, 0.0  ;;  %v1547_v39 = vpop.f32.mrb[2].mxu1 }
 0x1b6   :  { %v609_v40 = vpop.f32.mrb[3].mxu1  ;;  %v615_v45 = vadd.f32 %v1547_v39, %v1959_v33 }
 0x1b7   :  { %1383 = vmatmul.mubr.msk.f32.vlgmr.msra.gmra.mrb[32].mxu0 %vm818_vm3, %v758_v38  ;;  %v610_v42 = vadd.f32 %v1959_v33, %v609_v40 }
 0x1b8   :  { %985 = vmatprep.mubr.f32.mxu0 %v1650_v32  ;;  %v761_v49 = vmax.f32 %v615_v45, 0.0 }
 0x1b9   :  { %v1550_v43 = vpop.f32.mrb[4].mxu1  ;;  %v760_v46 = vmax.f32 %v610_v42, 0.0 }
 0x1ba   :  { %v619_v44 = vpop.f32.mrb[5].mxu1  ;;  %v625_v53 = vadd.f32 %v1550_v43, %v1959_v33 }
 0x1bb   :  { %1384 = vmatmul.mubr.msk.f32.gmra.mrb[34].mxu0 %vm818_vm3, %v759_v41  ;;  %v620_v50 = vadd.f32 %v1959_v33, %v619_v44 }
 0x1bc   :  { %991 = vmatprep.mubr.f32.mxu0 %v1650_v32  ;;  %v763_v58 = vmax.f32 %v625_v53, 0.0 }
 0x1bd   :  { %v1553_v47 = vpop.f32.mrb[6].mxu1  ;;  %v762_v54 = vmax.f32 %v620_v50, 0.0 }
 0x1be   :  { %v629_v48 = vpop.f32.mrb[7].mxu1  ;;  %v635_v62 = vadd.f32 %v1553_v47, %v1959_v33 }
 0x1bf   :  { %1385 = vmatmul.mubr.msk.f32.gmra.mrb[36].mxu0 %vm818_vm3, %v760_v46  ;;  %v630_v59 = vadd.f32 %v1959_v33, %v629_v48 }
 0x1c0   :  { %997 = vmatprep.mubr.f32.mxu0 %v1650_v32  ;;  %v765_v2 = vmax.f32 %v635_v62, 0.0 }
 0x1c1   :  { %v1556_v51 = vpop.f32.mrb[8].mxu1  ;;  %v764_v63 = vmax.f32 %v630_v59, 0.0 }
 0x1c2   :  { %v639_v52 = vpop.f32.mrb[9].mxu1  ;;  %v645_v9 = vadd.f32 %v1556_v51, %v1959_v33 }
 0x1c3   :  { %1386 = vmatmul.mubr.msk.f32.gmra.mrb[38].mxu0 %vm818_vm3, %v761_v49  ;;  %v640_v3 = vadd.f32 %v1959_v33, %v639_v52 }
 0x1c4   :  { %1003 = vmatprep.mubr.f32.mxu0 %v1650_v32  ;;  %v767_v14 = vmax.f32 %v645_v9, 0.0 }
 0x1c5   :  { %v1559_v55 = vpop.f32.mrb[10].mxu1  ;;  %v766_v10 = vmax.f32 %v640_v3, 0.0 }
 0x1c6   :  { %v649_v56 = vpop.f32.mrb[11].mxu1  ;;  %v655_v20 = vadd.f32 %v1559_v55, %v1959_v33 }
 0x1c7   :  { %1387 = vmatmul.mubr.msk.f32.gmra.mrb[40].mxu0 %vm818_vm3, %v762_v54  ;;  %v650_v15 = vadd.f32 %v1959_v33, %v649_v56 }
 0x1c8   :  { %1009 = vmatprep.mubr.f32.mxu0 %v1650_v32  ;;  %v769_v26 = vmax.f32 %v655_v20, 0.0 }
 0x1c9   :  { %v1562_v60 = vpop.f32.mrb[12].mxu1  ;;  %v768_v21 = vmax.f32 %v650_v15, 0.0 }
 0x1ca   :  { %v659_v61 = vpop.f32.mrb[13].mxu1  ;;  %v665_v34 = vadd.f32 %v1562_v60, %v1959_v33 }
 0x1cb   :  { %1388 = vmatmul.mubr.msk.f32.gmra.mrb[42].mxu0 %vm818_vm3, %v763_v58  ;;  %v660_v27 = vadd.f32 %v1959_v33, %v659_v61 }
 0x1cc   :  { %1015 = vmatprep.mubr.f32.mxu0 %v1650_v32  ;;  %v771_v42 = vmax.f32 %v665_v34, 0.0 }
 0x1cd   :  { %v1981_v0 = vpop.f32.mrb[14].mxu1  ;;  %v770_v35 = vmax.f32 %v660_v27, 0.0 }
 0x1ce   :  { %v1983_v1 = vpop.f32.mrb[15].mxu1  ;;  %v675_v50 = vadd.f32 %v1981_v0, %v1959_v33 }
 0x1cf   :  { %1389 = vmatmul.mubr.msk.f32.gmra.mrb[44].mxu0 %vm818_vm3, %v764_v63  ;;  %v670_v43 = vadd.f32 %v1959_v33, %v1983_v1 }
 0x1d0   :  { %1021 = vmatprep.mubr.f32.mxu0 %v1650_v32  ;;  %v773_v59 = vmax.f32 %v675_v50, 0.0 }
 0x1d1   :  { %v1568_v4 = vpop.f32.mrb[16].mxu1  ;;  %v772_v51 = vmax.f32 %v670_v43, 0.0 }
 0x1d2   :  { %v685_v5 = vadd.f32 %v1568_v4, %v1959_v33  ;;  %v679_v6 = vpop.f32.mrb[17].mxu1  ;;  %v808_v4 = vlaneseq }
 0x1d3   :  { %v1990_v7 = vadd.f32 %v1959_v33, %v679_v6  ;;  %1390 = vmatmul.mubr.msk.f32.gmra.mrb[46].mxu0 %vm818_vm3, %v765_v2 }
 0x1d4   :  { %v775_v8 = vmax.f32 %v685_v5, 0.0  ;;  %1027 = vmatprep.mubr.f32.mxu0 %v1650_v32  ;;  %v809_v5 = vshrl.u32 %v808_v4, 7 }
 0x1d5   :  { %v1571_v11 = vpop.f32.mrb[18].mxu1  ;;  %v774_v61 = vmax.f32 %v1990_v7, 0.0  ;;  %v806_v7 = vld [vmem:[%s2153_s6] sm:$0x3]  ;;  %s1651_s6 = smov [#allocation2]  }
 0x1d6   :  { %v689_v12 = vpop.f32.mrb[19].mxu1  ;;  %1400 = vmatmul.mubr.msk.f32.vlgmr.msra.gmra.mrb[32].mxu1 %vm818_vm3, %v775_v8  ;;  %v695_v16 = vadd.f32 %v1571_v11, %v1959_v33  ;;  %v810_v6 = vsub.s32 0, %v809_v5  ;;  %v814_v8 = vsub.s32 1, %v809_v5  ;;  %s1305_s9 = sshll.u32 %s1651_s6, 4  ;;  %s1306_s9 = int_to_ptr.vmem [resolvable:$true] %s1305_s9 }
 0x1d7   :  { %v690_v13 = vadd.f32 %v1959_v33, %v689_v12  ;;  %1391 = vmatmul.mubr.msk.f32.gmra.mrb[48].mxu0 %vm818_vm3, %v766_v10  ;;  %1087 = vmatprep.mubr.f32.mxu1 %v1650_v32  ;;  %s1626_s10 = scalar_lea.vmem %s1306_s9, 8192  ;;  %p1631_p1 = scmp.lt.s32.totalorder %s1306_s9, %s1306_s9 }
 0x1d8   :  { %1033 = vmatprep.mubr.f32.mxu0 %v1650_v32  ;;  %v777_v22 = vmax.f32 %v695_v16, 0.0  ;;  %v2067_v9 = vrot.slane %v806_v7, %v810_v6  ;;  %v2069_v10 = vrot.slane %v806_v7, %v814_v8  ;;  %p1627_p0 = scmp.ne.s32.totalorder %s1306_s9, %s1626_s10  ;;  %p1632_p2 = scmp.lt.s32.totalorder %s1626_s10, %s1626_s10 }
 0x1d9   :  { %v776_v17 = vmax.f32 %v690_v13, 0.0  ;;  %v1574_v18 = vpop.f32.mrb[20].mxu1 }
 0x1da   :  { %v699_v19 = vpop.f32.mrb[21].mxu1  ;;  %v705_v28 = vadd.f32 %v1574_v18, %v1959_v33  ;;  %p1633_p3 = por %p1632_p2, %p1631_p1 }
 0x1db   :  { %1392 = vmatmul.mubr.msk.f32.gmra.mrb[50].mxu0 %vm818_vm3, %v767_v14  ;;  %1401 = vmatmul.mubr.msk.f32.gmra.mrb[34].mxu1 %vm818_vm3, %v776_v17  ;;  %v700_v23 = vadd.f32 %v1959_v33, %v699_v19 }
 0x1dc   :  { %1039 = vmatprep.mubr.f32.mxu0 %v1650_v32  ;;  %1093 = vmatprep.mubr.f32.mxu1 %v1650_v32  ;;  %v779_v36 = vmax.f32 %v705_v28, 0.0  ;;  %p1634_p4 = pnand %p1633_p3, %p1627_p0 }
 0x1dd   :  { %v1577_v24 = vpop.f32.mrb[22].mxu1  ;;  %v778_v29 = vmax.f32 %v700_v23, 0.0 }
 0x1de   :  { %v709_v25 = vpop.f32.mrb[23].mxu1  ;;  %v715_v44 = vadd.f32 %v1577_v24, %v1959_v33 }
 0x1df   :  { %1393 = vmatmul.mubr.msk.f32.gmra.mrb[52].mxu0 %vm818_vm3, %v768_v21  ;;  %1402 = vmatmul.mubr.msk.f32.gmra.mrb[36].mxu1 %vm818_vm3, %v777_v22  ;;  %v710_v37 = vadd.f32 %v1959_v33, %v709_v25 }
 0x1e0   :  { %1045 = vmatprep.mubr.f32.mxu0 %v1650_v32  ;;  %1099 = vmatprep.mubr.f32.mxu1 %v1650_v32  ;;  %v781_v52 = vmax.f32 %v715_v44, 0.0 }
 0x1e1   :  { %v1580_v57 = vpop.f32.mrb[24].mxu1  ;;  %v780_v45 = vmax.f32 %v710_v37, 0.0 }
 0x1e2   :  { %v725_v30 = vadd.f32 %v1580_v57, %v1959_v33  ;;  %v719_v31 = vpop.f32.mrb[25].mxu1 }
 0x1e3   :  { %1394 = vmatmul.mubr.msk.f32.gmra.mrb[54].mxu0 %vm818_vm3, %v769_v26  ;;  %1403 = vmatmul.mubr.msk.f32.gmra.mrb[38].mxu1 %vm818_vm3, %v778_v29  ;;  %v720_v53 = vadd.f32 %v1959_v33, %v719_v31 }
 0x1e4   :  { %1051 = vmatprep.mubr.f32.mxu0 %v1650_v32  ;;  %1105 = vmatprep.mubr.f32.mxu1 %v1650_v32  ;;  %v783_v62 = vmax.f32 %v725_v30, 0.0 }
 0x1e5   :  { %v1583_v38 = vpop.f32.mrb[26].mxu1  ;;  %v782_v60 = vmax.f32 %v720_v53, 0.0 }
 0x1e6   :  { %v735_v39 = vadd.f32 %v1583_v38, %v1959_v33  ;;  %v729_v40 = vpop.f32.mrb[27].mxu1 }
 0x1e7   :  { %1395 = vmatmul.mubr.msk.f32.gmra.mrb[56].mxu0 %vm818_vm3, %v770_v35  ;;  %1404 = vmatmul.mubr.msk.f32.gmra.mrb[40].mxu1 %vm818_vm3, %v779_v36  ;;  %v730_v41 = vadd.f32 %v1959_v33, %v729_v40 }
 0x1e8   :  { %1057 = vmatprep.mubr.f32.mxu0 %v1650_v32  ;;  %1111 = vmatprep.mubr.f32.mxu1 %v1650_v32  ;;  %v785_v63 = vmax.f32 %v735_v39, 0.0 }
 0x1e9   :  { %v1586_v46 = vpop.f32.mrb[28].mxu1 }
 0x1ea   :  { %v745_v47 = vadd.f32 %v1586_v46, %v1959_v33  ;;  %v739_v48 = vpop.f32.mrb[29].mxu1 }
 0x1eb   :  { %1396 = vmatmul.mubr.msk.f32.gmra.mrb[58].mxu0 %vm818_vm3, %v771_v42  ;;  %1405 = vmatmul.mubr.msk.f32.gmra.mrb[42].mxu1 %vm818_vm3, %v780_v45  ;;  %v740_v49 = vadd.f32 %v1959_v33, %v739_v48 }
 0x1ec   :  { %1063 = vmatprep.mubr.f32.mxu0 %v1650_v32  ;;  %1117 = vmatprep.mubr.f32.mxu1 %v1650_v32  ;;  %v787_v1 = vmax.f32 %v745_v47, 0.0 }
 0x1ed   :  { %v1589_v54 = vpop.f32.mrb[30].mxu1  ;;  %v786_v0 = vmax.f32 %v740_v49, 0.0 }
 0x1ee   :  { %v755_v55 = vadd.f32 %v1589_v54, %v1959_v33  ;;  %v749_v56 = vpop.f32.mrb[31].mxu1 }
 0x1ef   :  { %1397 = vmatmul.mubr.msk.f32.gmra.mrb[60].mxu0 %vm818_vm3, %v772_v51  ;;  %1406 = vmatmul.mubr.msk.f32.gmra.mrb[44].mxu1 %vm818_vm3, %v781_v52  ;;  %v750_v58 = vadd.f32 %v1959_v33, %v749_v56  ;;  %v784_v33 = vmax.f32 %v730_v41, 0.0 }
 0x1f0   :  { %1069 = vmatprep.mubr.f32.mxu0 %v1650_v32  ;;  %1123 = vmatprep.mubr.f32.mxu1 %v1650_v32  ;;  %v789_v3 = vmax.f32 %v755_v55, 0.0 }
 0x1f1   :  { %v788_v2 = vmax.f32 %v750_v58, 0.0 }
 0x1f3   :  { %1398 = vmatmul.mubr.msk.f32.gmra.mrb[62].mxu0 %vm818_vm3, %v773_v59  ;;  %1407 = vmatmul.mubr.msk.f32.gmra.mrb[46].mxu1 %vm818_vm3, %v782_v60 }
 0x1f4   :  { %1075 = vmatprep.mubr.f32.mxu0 %v1650_v32  ;;  %1129 = vmatprep.mubr.f32.mxu1 %v1650_v32 }
 0x1f7   :  { %1399 = vmatmul.mubr.msk.f32.gmra.mrb[64].mxu0 %vm818_vm3, %v774_v61  ;;  %1408 = vmatmul.mubr.msk.f32.gmra.mrb[48].mxu1 %vm818_vm3, %v783_v62 }
 0x1f8   :  { %1135 = vmatprep.mubr.f32.mxu1 %v1650_v32 }
 0x1fb   :  { %1409 = vmatmul.mubr.msk.f32.gmra.mrb[50].mxu1 %vm818_vm3, %v784_v33 }
 0x1fc   :  { %1141 = vmatprep.mubr.f32.mxu1 %v1650_v32 }
 0x1ff   :  { %1410 = vmatmul.mubr.msk.f32.gmra.mrb[52].mxu1 %vm818_vm3, %v785_v63 }
 0x200   :  { %1147 = vmatprep.mubr.f32.mxu1 %v1650_v32 }
 0x203   :  { %1411 = vmatmul.mubr.msk.f32.gmra.mrb[54].mxu1 %vm818_vm3, %v786_v0 }
 0x204   :  { %1153 = vmatprep.mubr.f32.mxu1 %v1650_v32 }
 0x207   :  { %1412 = vmatmul.mubr.msk.f32.gmra.mrb[56].mxu1 %vm818_vm3, %v787_v1 }
 0x208   :  { %1159 = vmatprep.mubr.f32.mxu1 %v1650_v32 }
 0x20b   :  { %1413 = vmatmul.mubr.msk.f32.gmra.mrb[58].mxu1 %vm818_vm3, %v788_v2 }
 0x20c   :  { %1165 = vmatprep.mubr.f32.mxu1 %v1650_v32 }
 0x20f   :  { %1414 = vmatmul.mubr.msk.f32.gmra.mrb[60].mxu1 %vm818_vm3, %v789_v3 }
 0x28a   :  { %v981_v11 = vpop.f32.mrb[32].mxu0 }
 0x28b   :  { %v982_v12 = vadd.f32 %v981_v11, %v2067_v9  ;;  %v983_v13 = vpop.f32.mrb[33].mxu0 }
 0x28c   :  { %v984_v32 = vadd.f32 %v983_v13, %v2069_v10 }
 0x28d   :  { %v1172_v14 = vmax.f32 %v982_v12, 0.0 }
 0x28e   :  { %v1173_v15 = vmax.f32 %v984_v32, 0.0  ;;  %v987_v16 = vpop.f32.mrb[34].mxu0 }
 0x28f   :  { %1236 = vst [vmem:[#allocation2] sm:$0xff] %v1172_v14  ;;  %v988_v17 = vadd.f32 %v987_v16, %v2067_v9  ;;  %v989_v18 = vpop.f32.mrb[35].mxu0 }
 0x290   :  { %1237 = vst [vmem:[#allocation2 + $0x8] sm:$0xff] %v1173_v15  ;;  %v990_v19 = vadd.f32 %v989_v18, %v2069_v10 }
 0x291   :  { %v1174_v20 = vmax.f32 %v988_v17, 0.0 }
 0x292   :  { %v1175_v21 = vmax.f32 %v990_v19, 0.0  ;;  %v993_v22 = vpop.f32.mrb[36].mxu0 }
 0x293   :  { %1238 = vst [vmem:[#allocation2 + $0x10] sm:$0xff] %v1174_v20  ;;  %v994_v23 = vadd.f32 %v993_v22, %v2067_v9  ;;  %v995_v24 = vpop.f32.mrb[37].mxu0 }
 0x294   :  { %1239 = vst [vmem:[#allocation2 + $0x18] sm:$0xff] %v1175_v21  ;;  %v996_v25 = vadd.f32 %v995_v24, %v2069_v10 }
 0x295   :  { %v1176_v26 = vmax.f32 %v994_v23, 0.0 }
 0x296   :  { %v1177_v27 = vmax.f32 %v996_v25, 0.0  ;;  %v999_v28 = vpop.f32.mrb[38].mxu0 }
 0x297   :  { %1240 = vst [vmem:[#allocation2 + $0x20] sm:$0xff] %v1176_v26  ;;  %v1000_v29 = vadd.f32 %v999_v28, %v2067_v9  ;;  %v1001_v57 = vpop.f32.mrb[39].mxu0 }
 0x298   :  { %1241 = vst [vmem:[#allocation2 + $0x28] sm:$0xff] %v1177_v27  ;;  %v1002_v30 = vadd.f32 %v1001_v57, %v2069_v10 }
 0x299   :  { %v1178_v31 = vmax.f32 %v1000_v29, 0.0 }
 0x29a   :  { %v1179_v34 = vmax.f32 %v1002_v30, 0.0  ;;  %v1005_v35 = vpop.f32.mrb[40].mxu0 }
 0x29b   :  { %1242 = vst [vmem:[#allocation2 + $0x30] sm:$0xff] %v1178_v31  ;;  %v1006_v36 = vadd.f32 %v1005_v35, %v2067_v9  ;;  %v1007_v37 = vpop.f32.mrb[41].mxu0 }
 0x29c   :  { %1243 = vst [vmem:[#allocation2 + $0x38] sm:$0xff] %v1179_v34  ;;  %v1008_v38 = vadd.f32 %v1007_v37, %v2069_v10 }
 0x29d   :  { %v1180_v39 = vmax.f32 %v1006_v36, 0.0 }
 0x29e   :  { %v1181_v40 = vmax.f32 %v1008_v38, 0.0  ;;  %v1011_v41 = vpop.f32.mrb[42].mxu0 }
 0x29f   :  { %1244 = vst [vmem:[#allocation2 + $0x40] sm:$0xff] %v1180_v39  ;;  %v1012_v42 = vadd.f32 %v1011_v41, %v2067_v9  ;;  %v1013_v43 = vpop.f32.mrb[43].mxu0 }
 0x2a0   :  { %1245 = vst [vmem:[#allocation2 + $0x48] sm:$0xff] %v1181_v40  ;;  %v1014_v44 = vadd.f32 %v1013_v43, %v2069_v10 }
 0x2a1   :  { %v1182_v45 = vmax.f32 %v1012_v42, 0.0 }
 0x2a2   :  { %v1183_v46 = vmax.f32 %v1014_v44, 0.0  ;;  %v1017_v47 = vpop.f32.mrb[44].mxu0 }
 0x2a3   :  { %1246 = vst [vmem:[#allocation2 + $0x50] sm:$0xff] %v1182_v45  ;;  %v1018_v48 = vadd.f32 %v1017_v47, %v2067_v9  ;;  %v1019_v49 = vpop.f32.mrb[45].mxu0 }
 0x2a4   :  { %1247 = vst [vmem:[#allocation2 + $0x58] sm:$0xff] %v1183_v46  ;;  %v1020_v50 = vadd.f32 %v1019_v49, %v2069_v10 }
 0x2a5   :  { %v1184_v51 = vmax.f32 %v1018_v48, 0.0 }
 0x2a6   :  { %v1185_v52 = vmax.f32 %v1020_v50, 0.0  ;;  %v1023_v53 = vpop.f32.mrb[46].mxu0 }
 0x2a7   :  { %1248 = vst [vmem:[#allocation2 + $0x60] sm:$0xff] %v1184_v51  ;;  %v1024_v54 = vadd.f32 %v1023_v53, %v2067_v9  ;;  %v1025_v55 = vpop.f32.mrb[47].mxu0 }
 0x2a8   :  { %1249 = vst [vmem:[#allocation2 + $0x68] sm:$0xff] %v1185_v52  ;;  %v1026_v56 = vadd.f32 %v1025_v55, %v2069_v10 }
 0x2a9   :  { %v1186_v58 = vmax.f32 %v1024_v54, 0.0  ;;  %v1083_v59 = vpop.f32.mrb[32].mxu1 }
 0x2aa   :  { %v1187_v60 = vmax.f32 %v1026_v56, 0.0  ;;  %v1084_v61 = vadd.f32 %v1083_v59, %v2067_v9  ;;  %v1029_v62 = vpop.f32.mrb[48].mxu0  ;;  %v1085_v33 = vpop.f32.mrb[33].mxu1 }
 0x2ab   :  { %1250 = vst [vmem:[#allocation2 + $0x70] sm:$0xff] %v1186_v58  ;;  %v1030_v63 = vadd.f32 %v1029_v62, %v2067_v9  ;;  %v1086_v0 = vadd.f32 %v1085_v33, %v2069_v10  ;;  %v1031_v1 = vpop.f32.mrb[49].mxu0 }
 0x2ac   :  { %1251 = vst [vmem:[#allocation2 + $0x78] sm:$0xff] %v1187_v60  ;;  %v1206_v2 = vmax.f32 %v1084_v61, 0.0  ;;  %v1032_v3 = vadd.f32 %v1031_v1, %v2069_v10 }
 0x2ad   :  { %v1188_v4 = vmax.f32 %v1030_v63, 0.0  ;;  %v1207_v5 = vmax.f32 %v1086_v0, 0.0 }
 0x2ae   :  { %1270 = vst [vmem:[#allocation2 + $0x110] sm:$0xff] %v1206_v2  ;;  %v1189_v6 = vmax.f32 %v1032_v3, 0.0  ;;  %v1035_v7 = vpop.f32.mrb[50].mxu0  ;;  %v1089_v8 = vpop.f32.mrb[34].mxu1 }
 0x2af   :  { %1252 = vst [vmem:[#allocation2 + $0x80] sm:$0xff] %v1188_v4  ;;  %1271 = vst [vmem:[#allocation2 + $0x118] sm:$0xff] %v1207_v5  ;;  %v1036_v11 = vadd.f32 %v1035_v7, %v2067_v9  ;;  %v1090_v12 = vadd.f32 %v1089_v8, %v2067_v9  ;;  %v1037_v13 = vpop.f32.mrb[51].mxu0  ;;  %v1091_v32 = vpop.f32.mrb[35].mxu1 }
 0x2b0   :  { %1253 = vst [vmem:[#allocation2 + $0x88] sm:$0xff] %v1189_v6  ;;  %v1038_v14 = vadd.f32 %v1037_v13, %v2069_v10  ;;  %v1092_v15 = vadd.f32 %v1091_v32, %v2069_v10 }
 0x2b1   :  { %v1190_v16 = vmax.f32 %v1036_v11, 0.0  ;;  %v1208_v17 = vmax.f32 %v1090_v12, 0.0 }
 0x2b2   :  { %v1191_v18 = vmax.f32 %v1038_v14, 0.0  ;;  %v1209_v19 = vmax.f32 %v1092_v15, 0.0  ;;  %v1041_v20 = vpop.f32.mrb[52].mxu0  ;;  %v1095_v21 = vpop.f32.mrb[36].mxu1 }
 0x2b3   :  { %1254 = vst [vmem:[#allocation2 + $0x90] sm:$0xff] %v1190_v16  ;;  %1272 = vst [vmem:[#allocation2 + $0x120] sm:$0xff] %v1208_v17  ;;  %v1042_v22 = vadd.f32 %v1041_v20, %v2067_v9  ;;  %v1096_v23 = vadd.f32 %v1095_v21, %v2067_v9  ;;  %v1043_v24 = vpop.f32.mrb[53].mxu0  ;;  %v1097_v25 = vpop.f32.mrb[37].mxu1 }
 0x2b4   :  { %1255 = vst [vmem:[#allocation2 + $0x98] sm:$0xff] %v1191_v18  ;;  %1273 = vst [vmem:[#allocation2 + $0x128] sm:$0xff] %v1209_v19  ;;  %v1044_v26 = vadd.f32 %v1043_v24, %v2069_v10  ;;  %v1098_v27 = vadd.f32 %v1097_v25, %v2069_v10 }
 0x2b5   :  { %v1192_v28 = vmax.f32 %v1042_v22, 0.0  ;;  %v1210_v29 = vmax.f32 %v1096_v23, 0.0 }
 0x2b6   :  { %v1193_v57 = vmax.f32 %v1044_v26, 0.0  ;;  %v1211_v30 = vmax.f32 %v1098_v27, 0.0  ;;  %v1047_v31 = vpop.f32.mrb[54].mxu0  ;;  %v1101_v34 = vpop.f32.mrb[38].mxu1 }
 0x2b7   :  { %1256 = vst [vmem:[#allocation2 + $0xa0] sm:$0xff] %v1192_v28  ;;  %1274 = vst [vmem:[#allocation2 + $0x130] sm:$0xff] %v1210_v29  ;;  %v1048_v35 = vadd.f32 %v1047_v31, %v2067_v9  ;;  %v1102_v36 = vadd.f32 %v1101_v34, %v2067_v9  ;;  %v1049_v37 = vpop.f32.mrb[55].mxu0  ;;  %v1103_v38 = vpop.f32.mrb[39].mxu1 }
 0x2b8   :  { %1257 = vst [vmem:[#allocation2 + $0xa8] sm:$0xff] %v1193_v57  ;;  %1275 = vst [vmem:[#allocation2 + $0x138] sm:$0xff] %v1211_v30  ;;  %v1050_v39 = vadd.f32 %v1049_v37, %v2069_v10  ;;  %v1104_v40 = vadd.f32 %v1103_v38, %v2069_v10 }
 0x2b9   :  { %v1194_v41 = vmax.f32 %v1048_v35, 0.0  ;;  %v1212_v42 = vmax.f32 %v1102_v36, 0.0 }
 0x2ba   :  { %v1195_v43 = vmax.f32 %v1050_v39, 0.0  ;;  %v1213_v44 = vmax.f32 %v1104_v40, 0.0  ;;  %v1053_v45 = vpop.f32.mrb[56].mxu0  ;;  %v1107_v46 = vpop.f32.mrb[40].mxu1 }
 0x2bb   :  { %1258 = vst [vmem:[#allocation2 + $0xb0] sm:$0xff] %v1194_v41  ;;  %1276 = vst [vmem:[#allocation2 + $0x140] sm:$0xff] %v1212_v42  ;;  %v1054_v47 = vadd.f32 %v1053_v45, %v2067_v9  ;;  %v1108_v48 = vadd.f32 %v1107_v46, %v2067_v9  ;;  %v1055_v49 = vpop.f32.mrb[57].mxu0  ;;  %v1109_v50 = vpop.f32.mrb[41].mxu1 }
 0x2bc   :  { %1259 = vst [vmem:[#allocation2 + $0xb8] sm:$0xff] %v1195_v43  ;;  %1277 = vst [vmem:[#allocation2 + $0x148] sm:$0xff] %v1213_v44  ;;  %v1056_v51 = vadd.f32 %v1055_v49, %v2069_v10  ;;  %v1110_v52 = vadd.f32 %v1109_v50, %v2069_v10 }
 0x2bd   :  { %v1196_v53 = vmax.f32 %v1054_v47, 0.0  ;;  %v1214_v54 = vmax.f32 %v1108_v48, 0.0 }
 0x2be   :  { %v1197_v55 = vmax.f32 %v1056_v51, 0.0  ;;  %v1215_v56 = vmax.f32 %v1110_v52, 0.0  ;;  %v1059_v58 = vpop.f32.mrb[58].mxu0  ;;  %v1113_v59 = vpop.f32.mrb[42].mxu1 }
 0x2bf   :  { %1260 = vst [vmem:[#allocation2 + $0xc0] sm:$0xff] %v1196_v53  ;;  %1278 = vst [vmem:[#allocation2 + $0x150] sm:$0xff] %v1214_v54  ;;  %v1060_v60 = vadd.f32 %v1059_v58, %v2067_v9  ;;  %v1114_v61 = vadd.f32 %v1113_v59, %v2067_v9  ;;  %v1061_v62 = vpop.f32.mrb[59].mxu0  ;;  %v1115_v33 = vpop.f32.mrb[43].mxu1 }
 0x2c0   :  { %1261 = vst [vmem:[#allocation2 + $0xc8] sm:$0xff] %v1197_v55  ;;  %1279 = vst [vmem:[#allocation2 + $0x158] sm:$0xff] %v1215_v56  ;;  %v1062_v63 = vadd.f32 %v1061_v62, %v2069_v10  ;;  %v1116_v0 = vadd.f32 %v1115_v33, %v2069_v10 }
 0x2c1   :  { %v1198_v1 = vmax.f32 %v1060_v60, 0.0  ;;  %v1216_v2 = vmax.f32 %v1114_v61, 0.0 }
 0x2c2   :  { %v1199_v3 = vmax.f32 %v1062_v63, 0.0  ;;  %v1217_v4 = vmax.f32 %v1116_v0, 0.0  ;;  %v1065_v5 = vpop.f32.mrb[60].mxu0  ;;  %v1119_v6 = vpop.f32.mrb[44].mxu1 }
 0x2c3   :  { %1262 = vst [vmem:[#allocation2 + $0xd0] sm:$0xff] %v1198_v1  ;;  %1280 = vst [vmem:[#allocation2 + $0x160] sm:$0xff] %v1216_v2  ;;  %v1066_v7 = vadd.f32 %v1065_v5, %v2067_v9  ;;  %v1120_v8 = vadd.f32 %v1119_v6, %v2067_v9  ;;  %v1067_v11 = vpop.f32.mrb[61].mxu0  ;;  %v1121_v12 = vpop.f32.mrb[45].mxu1 }
 0x2c4   :  { %1263 = vst [vmem:[#allocation2 + $0xd8] sm:$0xff] %v1199_v3  ;;  %1281 = vst [vmem:[#allocation2 + $0x168] sm:$0xff] %v1217_v4  ;;  %v1068_v13 = vadd.f32 %v1067_v11, %v2069_v10  ;;  %v1122_v32 = vadd.f32 %v1121_v12, %v2069_v10 }
 0x2c5   :  { %v1200_v14 = vmax.f32 %v1066_v7, 0.0  ;;  %v1218_v15 = vmax.f32 %v1120_v8, 0.0 }
 0x2c6   :  { %v1201_v16 = vmax.f32 %v1068_v13, 0.0  ;;  %v1219_v17 = vmax.f32 %v1122_v32, 0.0  ;;  %v1071_v18 = vpop.f32.mrb[62].mxu0  ;;  %v1125_v19 = vpop.f32.mrb[46].mxu1 }
 0x2c7   :  { %1264 = vst [vmem:[#allocation2 + $0xe0] sm:$0xff] %v1200_v14  ;;  %1282 = vst [vmem:[#allocation2 + $0x170] sm:$0xff] %v1218_v15  ;;  %v1072_v20 = vadd.f32 %v1071_v18, %v2067_v9  ;;  %v1126_v21 = vadd.f32 %v1125_v19, %v2067_v9  ;;  %v1073_v22 = vpop.f32.mrb[63].mxu0  ;;  %v1127_v23 = vpop.f32.mrb[47].mxu1 }
 0x2c8   :  { %1265 = vst [vmem:[#allocation2 + $0xe8] sm:$0xff] %v1201_v16  ;;  %1283 = vst [vmem:[#allocation2 + $0x178] sm:$0xff] %v1219_v17  ;;  %v1074_v24 = vadd.f32 %v1073_v22, %v2069_v10  ;;  %v1128_v25 = vadd.f32 %v1127_v23, %v2069_v10 }
 0x2c9   :  { %v1202_v26 = vmax.f32 %v1072_v20, 0.0  ;;  %v1220_v27 = vmax.f32 %v1126_v21, 0.0 }
 0x2ca   :  { %v1203_v28 = vmax.f32 %v1074_v24, 0.0  ;;  %v1221_v29 = vmax.f32 %v1128_v25, 0.0  ;;  %v1077_v57 = vpop.f32.mrb[64].mxu0  ;;  %v1131_v30 = vpop.f32.mrb[48].mxu1 }
 0x2cb   :  { %1266 = vst [vmem:[#allocation2 + $0xf0] sm:$0xff] %v1202_v26  ;;  %1284 = vst [vmem:[#allocation2 + $0x180] sm:$0xff] %v1220_v27  ;;  %v1078_v31 = vadd.f32 %v1077_v57, %v2067_v9  ;;  %v1132_v34 = vadd.f32 %v1131_v30, %v2067_v9  ;;  %v1079_v35 = vpop.f32.mrb[65].mxu0  ;;  %v1133_v36 = vpop.f32.mrb[49].mxu1 }
 0x2cc   :  { %1267 = vst [vmem:[#allocation2 + $0xf8] sm:$0xff] %v1203_v28  ;;  %1285 = vst [vmem:[#allocation2 + $0x188] sm:$0xff] %v1221_v29  ;;  %v1080_v37 = vadd.f32 %v1079_v35, %v2069_v10  ;;  %v1134_v38 = vadd.f32 %v1133_v36, %v2069_v10 }
 0x2cd   :  { %v1204_v39 = vmax.f32 %v1078_v31, 0.0  ;;  %v1222_v40 = vmax.f32 %v1132_v34, 0.0 }
 0x2ce   :  { %v1205_v41 = vmax.f32 %v1080_v37, 0.0  ;;  %v1223_v42 = vmax.f32 %v1134_v38, 0.0  ;;  %v1137_v43 = vpop.f32.mrb[50].mxu1 }
 0x2cf   :  { %1268 = vst [vmem:[#allocation2 + $0x100] sm:$0xff] %v1204_v39  ;;  %1286 = vst [vmem:[#allocation2 + $0x190] sm:$0xff] %v1222_v40  ;;  %v1138_v44 = vadd.f32 %v1137_v43, %v2067_v9  ;;  %v1139_v45 = vpop.f32.mrb[51].mxu1 }
 0x2d0   :  { %1269 = vst [vmem:[#allocation2 + $0x108] sm:$0xff] %v1205_v41  ;;  %1287 = vst [vmem:[#allocation2 + $0x198] sm:$0xff] %v1223_v42  ;;  %v1140_v46 = vadd.f32 %v1139_v45, %v2069_v10 }
 0x2d1   :  { %v1224_v47 = vmax.f32 %v1138_v44, 0.0 }
 0x2d2   :  { %v1225_v48 = vmax.f32 %v1140_v46, 0.0  ;;  %v1143_v49 = vpop.f32.mrb[52].mxu1 }
 0x2d3   :  { %1288 = vst [vmem:[#allocation2 + $0x1a0] sm:$0xff] %v1224_v47  ;;  %v1144_v50 = vadd.f32 %v1143_v49, %v2067_v9  ;;  %v1145_v51 = vpop.f32.mrb[53].mxu1 }
 0x2d4   :  { %1289 = vst [vmem:[#allocation2 + $0x1a8] sm:$0xff] %v1225_v48  ;;  %v1146_v52 = vadd.f32 %v1145_v51, %v2069_v10 }
 0x2d5   :  { %v1226_v53 = vmax.f32 %v1144_v50, 0.0 }
 0x2d6   :  { %v1227_v54 = vmax.f32 %v1146_v52, 0.0  ;;  %v1149_v55 = vpop.f32.mrb[54].mxu1 }
 0x2d7   :  { %1290 = vst [vmem:[#allocation2 + $0x1b0] sm:$0xff] %v1226_v53  ;;  %v1150_v56 = vadd.f32 %v1149_v55, %v2067_v9  ;;  %v1151_v58 = vpop.f32.mrb[55].mxu1 }
 0x2d8   :  { %1291 = vst [vmem:[#allocation2 + $0x1b8] sm:$0xff] %v1227_v54  ;;  %v1152_v59 = vadd.f32 %v1151_v58, %v2069_v10 }
 0x2d9   :  { %v1228_v60 = vmax.f32 %v1150_v56, 0.0 }
 0x2da   :  { %v1229_v61 = vmax.f32 %v1152_v59, 0.0  ;;  %v1155_v62 = vpop.f32.mrb[56].mxu1 }
 0x2db   :  { %1292 = vst [vmem:[#allocation2 + $0x1c0] sm:$0xff] %v1228_v60  ;;  %v1156_v33 = vadd.f32 %v1155_v62, %v2067_v9  ;;  %v1157_v63 = vpop.f32.mrb[57].mxu1 }
 0x2dc   :  { %1293 = vst [vmem:[#allocation2 + $0x1c8] sm:$0xff] %v1229_v61  ;;  %v1158_v0 = vadd.f32 %v1157_v63, %v2069_v10 }
 0x2dd   :  { %v1230_v1 = vmax.f32 %v1156_v33, 0.0 }
 0x2de   :  { %v1231_v2 = vmax.f32 %v1158_v0, 0.0  ;;  %v1161_v3 = vpop.f32.mrb[58].mxu1 }
 0x2df   :  { %1294 = vst [vmem:[#allocation2 + $0x1d0] sm:$0xff] %v1230_v1  ;;  %v1162_v4 = vadd.f32 %v1161_v3, %v2067_v9  ;;  %v1163_v5 = vpop.f32.mrb[59].mxu1 }
 0x2e0   :  { %1295 = vst [vmem:[#allocation2 + $0x1d8] sm:$0xff] %v1231_v2  ;;  %v1164_v6 = vadd.f32 %v1163_v5, %v2069_v10 }
 0x2e1   :  { %v1232_v7 = vmax.f32 %v1162_v4, 0.0 }
 0x2e2   :  { %v1233_v8 = vmax.f32 %v1164_v6, 0.0  ;;  %v1167_v11 = vpop.f32.mrb[60].mxu1 }
 0x2e3   :  { %1296 = vst [vmem:[#allocation2 + $0x1e0] sm:$0xff] %v1232_v7  ;;  %v1168_v12 = vadd.f32 %v1167_v11, %v2067_v9  ;;  %v1169_v13 = vpop.f32.mrb[61].mxu1 }
 0x2e4   :  { %1297 = vst [vmem:[#allocation2 + $0x1e8] sm:$0xff] %v1233_v8  ;;  %v1170_v32 = vadd.f32 %v1169_v13, %v2069_v10 }
 0x2e5   :  { %v1234_v14 = vmax.f32 %v1168_v12, 0.0 }
 0x2e6   :  { %v1235_v15 = vmax.f32 %v1170_v32, 0.0 }
 0x2e7   :  { %1298 = vst [vmem:[#allocation2 + $0x1f0] sm:$0xff] %v1234_v14 }
 0x2e8   :  { %1299 = vst [vmem:[#allocation2 + $0x1f8] sm:$0xff] %v1235_v15 }
 0x2e9   :  { %1637 = shalt.err (!%p1634_p4)
}
 0x2ea   :  { %s1638_s13 = scalar_lea.hbm %s2154_s7, 8192 }
 0x2eb   :  { %p1639_p5 = scmp.ne.s32.totalorder %s2154_s7, %s1638_s13  ;;  %p1642_p6 = scmp.lt.u32.totalorder %s1638_s13, %s2154_s7 }
 0x2ed   :  { %p1644_p7 = pnand %p1642_p6, %p1639_p5 }
 0x2ef   :  { %1647 = shalt.err (!%p1644_p7)
}
 0x2f0   :  { %s1652_s18 = smov 256   ;;  %s1653_s19 = smov 16  }
 0x2f1   :  { %1311 = dma.vmem_to_hbm [thread:$0]  %s1306_s9, 8192, %s2154_s7, [#allocation3], %s1652_s18, %s1652_s18, %s1653_s19  }
 0x2f2   :  { %1648 = dma.done.wait [#allocation3], 8192  }
 0x2f3   :  { %1649 = vsyncadd [#allocation3], 4294959104 }
 0x2f4   :  { %1315 = vsyncpa [#allocation3], 1 }

</bundles_post_ra>
